<compile_context>
chip_gen: v7x
topology: tpu7x:2x2x1
jax: 0.10.0
libtpu: 0.0.40
codegen_flags: <defaults>
</compile_context>

<pallas_src>
import functools

import jax
import jax.numpy as jnp
from jax import lax
from jax.experimental import pallas as pl
from jax.experimental.pallas import tpu as pltpu


def _moving_avg_kernel(x_ref, o_ref, *, kernel_size, stride, pad, seq_len, l_out):
    K = kernel_size
    L = seq_len
    tn = o_ref.shape[-1]

    # First / last input rows, used to synthesize edge-replicate padding.
    x0 = x_ref[pl.ds(0, 1), :].astype(jnp.float32)
    xN = x_ref[pl.ds(L - 1, 1), :].astype(jnp.float32)

    def boundary_row(t):
        # Output row t: tap k reads x[clamp(t*stride + k - pad, 0, L-1)].
        start = t * stride - pad
        n0 = max(0, min(K, -start))                    # taps clamped to row 0
        nL = max(0, min(K, start + K - 1 - (L - 1)))   # taps clamped to row L-1
        nmid = K - n0 - nL
        lo = max(0, start)
        row = jnp.zeros((1, tn), jnp.float32)
        if n0 > 0:
            row = row + float(n0) * x0
        if nL > 0:
            row = row + float(nL) * xN
        if nmid > 0:
            mid = x_ref[pl.ds(lo, nmid), :].astype(jnp.float32)
            row = row + jnp.sum(mid, axis=0, keepdims=True)
        return row

    # Interior output rows: windows lying fully inside [0, L) (no clamping).
    if L >= K:
        t_lo = -(-pad // stride)                 # ceil(pad / stride)
        t_hi = (L - K + pad) // stride
        t_lo = max(0, min(t_lo, l_out))
        t_hi = min(t_hi, l_out - 1)
        if t_hi < t_lo:
            t_lo, t_hi = l_out, l_out - 1        # degenerate: no interior rows
    else:
        t_lo, t_hi = l_out, l_out - 1            # every window touches the padding
    n_int = t_hi - t_lo + 1

    pieces = []

    for t in range(t_lo):                        # front boundary rows (static unroll)
        pieces.append(boundary_row(t))

    if n_int > 0:
        s0 = t_lo * stride - pad                 # window start of first interior row
        if stride == 1:
            # Shifted-doubling partial-sum tree over the whole block:
            #   W[i] = sum_{j < K} x[i + j],  i in [0, L - K].
            n_w = L - K + 1
            cur = x_ref[...].astype(jnp.float32)     # width-p running partial sums
            len_cur, p, rem, off = L, 1, K, 0
            W = None
            while rem > 0:
                if rem & 1:
                    piece = lax.slice_in_dim(cur, off, off + n_w, axis=0)
                    W = piece if W is None else W + piece
                    off += p
                rem >>= 1
                if rem > 0:
                    new_len = len_cur - p
                    cur = (lax.slice_in_dim(cur, 0, new_len, axis=0)
                           + lax.slice_in_dim(cur, p, p + new_len, axis=0))
                    len_cur, p = new_len, 2 * p
            pieces.append(lax.slice_in_dim(W, s0, s0 + n_int, axis=0))
        else:
            # stride > 1: strided window starts; accumulate per tap with strided
            # sublane reads straight from the VMEM ref (no padded temporaries).
            acc = jnp.zeros((n_int, tn), jnp.float32)
            for k in range(K):
                acc = acc + x_ref[
                    pl.ds(s0 + k, n_int, stride=stride), :
                ].astype(jnp.float32)
            pieces.append(acc)

    for t in range(t_hi + 1, l_out):             # tail boundary rows (static unroll)
        pieces.append(boundary_row(t))

    out = pieces[0] if len(pieces) == 1 else jnp.concatenate(pieces, axis=0)
    o_ref[...] = (out * (1.0 / K)).astype(o_ref.dtype)


def moving_avg(x, kernel_size, stride=1, *, lane_block_size=None):
    """x: (B, L, C) -> (B, L_out, C), matching the PyTorch moving_avg module."""
    B, L, C = x.shape
    pad = (kernel_size - 1) // 2
    L_pad = L + 2 * pad
    L_out = (L_pad - kernel_size) // stride + 1
    assert L_out >= 1, "kernel_size too large for this sequence length"

    # Lane tile along channels: whole extent when it fits, otherwise a multiple
    # of 128 targeting ~2 MiB input blocks (safe within scoped VMEM on all gens).
    LANE = 128
    itemsize = jnp.dtype(x.dtype).itemsize
    if lane_block_size is not None:
        tc = min(lane_block_size, C)
    elif C <= LANE:
        tc = C
    else:
        target = max(LANE, ((2 << 20) // max(1, L * itemsize)) // LANE * LANE)
        tc = C if target >= C else target
    grid_c = pl.cdiv(C, tc)

    kernel = functools.partial(
        _moving_avg_kernel,
        kernel_size=kernel_size, stride=stride, pad=pad, seq_len=L, l_out=L_out,
    )

    cost = pl.CostEstimate(
        flops=B * C * L_out * kernel_size,
        transcendentals=0,
        bytes_accessed=B * C * (L + L_out) * itemsize,
    )

    return pl.pallas_call(
        kernel,
        out_shape=jax.ShapeDtypeStruct((B, L_out, C), x.dtype),
        grid=(B, grid_c),
        in_specs=[pl.BlockSpec((pl.Squeezed(), L, tc), lambda b, j: (b, 0, j))],
        out_specs=pl.BlockSpec((pl.Squeezed(), L_out, tc), lambda b, j: (b, 0, j)),
        compiler_params=pltpu.CompilerParams(
            dimension_semantics=("parallel", "parallel"),
            vmem_limit_bytes=32 * 1024 * 1024,
        ),
        cost_estimate=cost,
    )(x)


def _reference(x, kernel_size, stride):
    # Pure-JAX reference mirroring the PyTorch forward exactly.
    pad = (kernel_size - 1) // 2
    front = jnp.repeat(x[:, 0:1, :], pad, axis=1)
    end = jnp.repeat(x[:, -1:, :], pad, axis=1)
    xp = jnp.concatenate([front, x, end], axis=1)  # (B, L_pad, C)
    L_pad = xp.shape[1]
    L_out = (L_pad - kernel_size) // stride + 1
    windows = jnp.stack(
        [xp[:, t * stride: t * stride + kernel_size, :] for t in range(L_out)],
        axis=1,
    )  # (B, L_out, K, C)
    return windows.mean(axis=2).astype(x.dtype)


if __name__ == "__main__":
    key = jax.random.PRNGKey(0)
    k1, k2 = jax.random.split(key)

    # Case 1: (B, L, C) = (2, 8, 32) — odd K, even K, K > L, and stride > 1.
    x = jax.random.normal(k1, (2, 8, 32), dtype=jnp.float32)
    for kernel_size, stride in ((5, 1), (4, 1), (25, 1), (5, 2)):
        out = jax.block_until_ready(moving_avg(x, kernel_size, stride))
        ref = _reference(x, kernel_size, stride)
        assert out.shape == ref.shape, (kernel_size, stride, out.shape, ref.shape)
        assert jnp.allclose(out, ref, atol=1e-5, rtol=1e-5), (
            f"mismatch for kernel_size={kernel_size} stride={stride}"
        )

    # Case 2: C > 128 and a forced partial lane tile (C not a multiple of tc).
    xw = jax.random.normal(k2, (2, 16, 160), dtype=jnp.float32)
    for lane_block in (None, 128):
        out = jax.block_until_ready(moving_avg(xw, 7, 1, lane_block_size=lane_block))
        ref = _reference(xw, 7, 1)
        assert out.shape == ref.shape
        assert jnp.allclose(out, ref, atol=1e-5, rtol=1e-5), (
            f"mismatch for wide-channel case lane_block={lane_block}"
        )

    print("KERNEL_OK")
</pallas_src>

<mosaic_0001>
module attributes {stable_mosaic.version = 11 : i64} {
  func.func @_moving_avg_kernel(%arg0: i32, %arg1: i32, %arg2: memref<1x8x32xf32, #tpu.memory_space<vmem>>, %arg3: memref<1x8x32xf32, #tpu.memory_space<vmem>>) attributes {dimension_semantics = [#tpu.dimension_semantics<parallel>, #tpu.dimension_semantics<parallel>], iteration_bounds = array<i64: 2, 1>, scalar_prefetch = 0 : i64, scratch_operands = 0 : i64, tpu.core_type = #tpu.core_type<tc>, window_params = [{transform_indices = @transform_0, window_bounds = array<i64: 1, 8, 32>}, {transform_indices = @transform_1, window_bounds = array<i64: 1, 8, 32>}]} {
    %c0 = arith.constant 0 : index
    %c0_0 = arith.constant 0 : index
    %c0_1 = arith.constant 0 : index
    %0 = vector.load %arg2[%c0, %c0_0, %c0_1] : memref<1x8x32xf32, #tpu.memory_space<vmem>>, vector<1x1x32xf32>
    %1 = vector.shape_cast %0 : vector<1x1x32xf32> to vector<1x32xf32>
    %c0_2 = arith.constant 0 : index
    %c7 = arith.constant 7 : index
    %c0_3 = arith.constant 0 : index
    %2 = vector.load %arg2[%c0_2, %c7, %c0_3] : memref<1x8x32xf32, #tpu.memory_space<vmem>>, vector<1x1x32xf32>
    %3 = vector.shape_cast %2 : vector<1x1x32xf32> to vector<1x32xf32>
    %cst = arith.constant 0.000000e+00 : f32
    %4 = vector.broadcast %cst : f32 to vector<1x32xf32>
    %cst_4 = arith.constant 2.000000e+00 : f32
    %5 = vector.broadcast %cst_4 : f32 to vector<1x32xf32>
    %6 = arith.mulf %5, %1 : vector<1x32xf32>
    %7 = arith.addf %4, %6 : vector<1x32xf32>
    %c0_5 = arith.constant 0 : index
    %c0_6 = arith.constant 0 : index
    %c0_7 = arith.constant 0 : index
    %8 = vector.load %arg2[%c0_5, %c0_6, %c0_7] : memref<1x8x32xf32, #tpu.memory_space<vmem>>, vector<1x3x32xf32>
    %9 = vector.shape_cast %8 : vector<1x3x32xf32> to vector<3x32xf32>
    %cst_8 = arith.constant dense<0.000000e+00> : vector<32xf32>
    %10 = vector.multi_reduction <add>, %9, %cst_8 [0] : vector<3x32xf32> to vector<32xf32>
    %11 = vector.shape_cast %10 : vector<32xf32> to vector<1x32xf32>
    %12 = arith.addf %7, %11 : vector<1x32xf32>
    %cst_9 = arith.constant 0.000000e+00 : f32
    %13 = vector.broadcast %cst_9 : f32 to vector<1x32xf32>
    %cst_10 = arith.constant 1.000000e+00 : f32
    %14 = vector.broadcast %cst_10 : f32 to vector<1x32xf32>
    %15 = arith.mulf %14, %1 : vector<1x32xf32>
    %16 = arith.addf %13, %15 : vector<1x32xf32>
    %c0_11 = arith.constant 0 : index
    %c0_12 = arith.constant 0 : index
    %c0_13 = arith.constant 0 : index
    %17 = vector.load %arg2[%c0_11, %c0_12, %c0_13] : memref<1x8x32xf32, #tpu.memory_space<vmem>>, vector<1x4x32xf32>
    %18 = vector.shape_cast %17 : vector<1x4x32xf32> to vector<4x32xf32>
    %cst_14 = arith.constant dense<0.000000e+00> : vector<32xf32>
    %19 = vector.multi_reduction <add>, %18, %cst_14 [0] : vector<4x32xf32> to vector<32xf32>
    %20 = vector.shape_cast %19 : vector<32xf32> to vector<1x32xf32>
    %21 = arith.addf %16, %20 : vector<1x32xf32>
    %c0_15 = arith.constant 0 : index
    %c0_16 = arith.constant 0 : index
    %c0_17 = arith.constant 0 : index
    %22 = vector.load %arg2[%c0_15, %c0_16, %c0_17] : memref<1x8x32xf32, #tpu.memory_space<vmem>>, vector<1x8x32xf32>
    %23 = vector.shape_cast %22 : vector<1x8x32xf32> to vector<8x32xf32>
    %24 = vector.extract_strided_slice %23 {offsets = [0, 0], sizes = [4, 32], strides = [1, 1]} : vector<8x32xf32> to vector<4x32xf32>
    %25 = vector.extract_strided_slice %23 {offsets = [0, 0], sizes = [7, 32], strides = [1, 1]} : vector<8x32xf32> to vector<7x32xf32>
    %26 = vector.extract_strided_slice %23 {offsets = [1, 0], sizes = [7, 32], strides = [1, 1]} : vector<8x32xf32> to vector<7x32xf32>
    %27 = arith.addf %25, %26 : vector<7x32xf32>
    %28 = vector.extract_strided_slice %27 {offsets = [0, 0], sizes = [5, 32], strides = [1, 1]} : vector<7x32xf32> to vector<5x32xf32>
    %29 = vector.extract_strided_slice %27 {offsets = [2, 0], sizes = [5, 32], strides = [1, 1]} : vector<7x32xf32> to vector<5x32xf32>
    %30 = arith.addf %28, %29 : vector<5x32xf32>
    %31 = vector.extract_strided_slice %30 {offsets = [1, 0], sizes = [4, 32], strides = [1, 1]} : vector<5x32xf32> to vector<4x32xf32>
    %32 = arith.addf %24, %31 : vector<4x32xf32>
    %33 = vector.extract_strided_slice %32 {offsets = [0, 0], sizes = [4, 32], strides = [1, 1]} : vector<4x32xf32> to vector<4x32xf32>
    %cst_18 = arith.constant 0.000000e+00 : f32
    %34 = vector.broadcast %cst_18 : f32 to vector<1x32xf32>
    %cst_19 = arith.constant 1.000000e+00 : f32
    %35 = vector.broadcast %cst_19 : f32 to vector<1x32xf32>
    %36 = arith.mulf %35, %3 : vector<1x32xf32>
    %37 = arith.addf %34, %36 : vector<1x32xf32>
    %c0_20 = arith.constant 0 : index
    %c4 = arith.constant 4 : index
    %c0_21 = arith.constant 0 : index
    %38 = vector.load %arg2[%c0_20, %c4, %c0_21] : memref<1x8x32xf32, #tpu.memory_space<vmem>>, vector<1x4x32xf32>
    %39 = vector.shape_cast %38 : vector<1x4x32xf32> to vector<4x32xf32>
    %cst_22 = arith.constant dense<0.000000e+00> : vector<32xf32>
    %40 = vector.multi_reduction <add>, %39, %cst_22 [0] : vector<4x32xf32> to vector<32xf32>
    %41 = vector.shape_cast %40 : vector<32xf32> to vector<1x32xf32>
    %42 = arith.addf %37, %41 : vector<1x32xf32>
    %cst_23 = arith.constant 0.000000e+00 : f32
    %43 = vector.broadcast %cst_23 : f32 to vector<1x32xf32>
    %cst_24 = arith.constant 2.000000e+00 : f32
    %44 = vector.broadcast %cst_24 : f32 to vector<1x32xf32>
    %45 = arith.mulf %44, %3 : vector<1x32xf32>
    %46 = arith.addf %43, %45 : vector<1x32xf32>
    %c0_25 = arith.constant 0 : index
    %c5 = arith.constant 5 : index
    %c0_26 = arith.constant 0 : index
    %47 = vector.load %arg2[%c0_25, %c5, %c0_26] : memref<1x8x32xf32, #tpu.memory_space<vmem>>, vector<1x3x32xf32>
    %48 = vector.shape_cast %47 : vector<1x3x32xf32> to vector<3x32xf32>
    %cst_27 = arith.constant dense<0.000000e+00> : vector<32xf32>
    %49 = vector.multi_reduction <add>, %48, %cst_27 [0] : vector<3x32xf32> to vector<32xf32>
    %50 = vector.shape_cast %49 : vector<32xf32> to vector<1x32xf32>
    %51 = arith.addf %46, %50 : vector<1x32xf32>
    %52 = tpu.concatenate %12, %21, %33, %42, %51 in 0 : vector<1x32xf32>, vector<1x32xf32>, vector<4x32xf32>, vector<1x32xf32>, vector<1x32xf32> -> vector<8x32xf32>
    %cst_28 = arith.constant 2.000000e-01 : f32
    %53 = vector.broadcast %cst_28 : f32 to vector<8x32xf32>
    %54 = arith.mulf %52, %53 : vector<8x32xf32>
    %c0_29 = arith.constant 0 : index
    %c0_30 = arith.constant 0 : index
    %c0_31 = arith.constant 0 : index
    %55 = vector.load %arg3[%c0_29, %c0_30, %c0_31] : memref<1x8x32xf32, #tpu.memory_space<vmem>>, vector<1x8x32xf32>
    %56 = vector.shape_cast %55 : vector<1x8x32xf32> to vector<8x32xf32>
    %57 = vector.shape_cast %54 : vector<8x32xf32> to vector<1x8x32xf32>
    tpu.vector_store %arg3[%c0_29, %c0_30, %c0_31], %57 {strides = array<i32>} : memref<1x8x32xf32, #tpu.memory_space<vmem>>, vector<1x8x32xf32>,
    return
  }
  func.func @transform_0(%arg0: i32, %arg1: i32) -> (i32, i32, i32) {
    %c0_i32 = arith.constant 0 : i32
    %c0_i32_0 = arith.constant 0 : i32
    return %arg0, %c0_i32, %arg1 : i32, i32, i32
  }
  func.func @transform_1(%arg0: i32, %arg1: i32) -> (i32, i32, i32) {
    %c0_i32 = arith.constant 0 : i32
    %c0_i32_0 = arith.constant 0 : i32
    return %arg0, %c0_i32, %arg1 : i32, i32, i32
  }
}

</mosaic_0001>

<bundles_post_ra>
// kernel: tpu_custom_call.1
= control target key start
LH: loop header
LB: loop body
LE: loop exit
PB: predicated region body
PF: predicated region fallthrough
CT: control target
= control target key end

     0   :  { %6 = vsyncpa [#allocation3], 0  ;;  %s714_s0 = inlined_call_operand.hbm [shape: f32[2,8,32], index: 0, kind: input, shape index: {}]   ;;  %s715_s1 = inlined_call_operand.hbm [shape: f32[2,8,32], index: 1, kind: output, shape index: {}]  }
   0x1   :  { %8 = vsyncpa [#allocation3 + $0x1], 0 }
   0x2   :  { %9 = vsyncpa [#allocation4], 0 }
   0x3   :  { %11 = vsyncpa [#allocation4 + $0x1], 0  ;;  %s527_s6 = smov 0   ;;  %s529_s7 = smov 0  }
   0x4   :  { %s531_s8 = smov 0   ;;  %s533_s9 = smov 0  }
   0x5   :  { %s535_s10 = smov 0   ;;  %s537_s11 = smov 0  }
   0x6 LB: > { %s326_s12 = sadd.s32 4294967295, %s513_s11   ;;  %s327_s13 = sadd.s32 4294967294, %s513_s11   ;;  %s513_s11 = sphi %s537_s11, %s17_s11   ;;  %s509_s10 = sphi %s535_s10, %s731_s10   ;;  %s505_s9 = sphi %s533_s9, %s730_s9   ;;  %s501_s8 = sphi %s531_s8, %s729_s8   ;;  %s497_s7 = sphi %s529_s7, %s728_s7   ;;  %s493_s6 = sphi %s527_s6, %s727_s6  }
   0x7   : > { %s29_s14 = sadd.s32 1, %s509_s10  ;;  %s38_s15 = sadd.s32 1, %s501_s8 }
   0x8   : > { %p31_p0 = scmp.ge.s32.totalorder %s29_s14, 2  ;;  %p45_p1 = scmp.ne.s32.totalorder %s501_s8, %s497_s7 }
   0x9   : > { %p46_p2 = scmp.eq.s32.totalorder %s513_s11, 0  ;;  %p51_p3 = scmp.ne.s32.totalorder %s497_s7, %s493_s6 }
   0xa   : > { %s733_s14 = smov (%p31_p0, %s29_s14), 0  ;;  %p52_p5 = scmp.eq.s32.totalorder %s326_s12, 0 }
   0xb   : > { %p568_p4 = por %p46_p2, %p45_p1  ;;  %s33_s17 = ssub.s32 %s509_s10, %s733_s14 }
   0xc   : > { %p77_p6 = scmp.eq.s32.totalorder %s326_s12, 1  ;;  %p36_p7 = scmp.eq.s32.totalorder %s33_s17, 0 }
   0xd   : > { %p574_p8 = por %p52_p5, %p51_p3  ;;  %p83_p10 = scmp.eq.s32.totalorder %s327_s13, 1 }
   0xe   : > { %p578_p9 = por %p77_p6, %p45_p1  ;;  %p351_p13 = scmp.lt.s32.totalorder %s513_s11, 2 }
   0xf   : > { %s583_s20 = scalar_select %p36_p7, %s501_s8, %s38_s15  }
  0x10   : > { %s719_s19 = scalar_select %p578_p9, 1, 0 }
  0x11   : > { %p585_p11 = por %p83_p10, %p51_p3  ;;  %s103_s22 = sand.u32 1, %s501_s8  }
  0x12   : > { %s330_s23 = sshll.u32 %s103_s22, 3  ;;  %s331_s24 = sshll.u32 %s509_s10, 7 }
  0x13   : > { %s720_s21 = scalar_select %p585_p11, 1, 0 }
  0x14   : > { %s596_s27 = scalar_lea.hbm %s714_s0, %s331_s24  ;;  %s107_s28 = scalar_lea.vmem [#allocation2], %s330_s23 }
  0x15   : > { %s115_s29 = sshll.u32 %s107_s28, 4  ;;  %p602_p0 = pnand %p351_p13, %p568_p4  ;;  %s598_s29 = int_to_ptr.vmem [resolvable:$true] %s115_s29 }
  0x16   : > { %s104_s2 = scalar_lea.sflag [#allocation3], %s103_s22  ;;  %s401_s3 = scalar_lea.hbm %s596_s27, 128 }
  0x17   : > { %p402_p3 = scmp.ne.s32.totalorder %s596_s27, %s401_s3  ;;  %p403_p5 = pneg %p602_p0 }
  0x18   : > { %s406_s12 = scalar_lea.hbm %s714_s0, 256  ;;  %p407_p4 = scmp.lt.u32.totalorder %s596_s27, %s714_s0 }
  0x19   : > { %p404_p6 = pnand %p403_p5, %p402_p3  ;;  %p408_p10 = scmp.lt.u32.totalorder %s406_s12, %s401_s3 }
  0x1a   : > { %p410_p12 = scmp.lt.u32.totalorder %s401_s3, %s596_s27 }
  0x1b   : > { %p405_p7 = pneg %p404_p6  ;;  %p409_p13 = por %p408_p10, %p407_p4 }
  0x1d   : > { %p411_p1 = por %p410_p12, %p409_p13 }
  0x1f   : > { %p412_p2 = pnand %p411_p1, %p405_p7 }
  0x21   : > { %415 = shalt.err (!%p412_p2)
}
  0x22   : > { %s416_s16 = scalar_lea.vmem %s598_s29, 128  ;;  %s515_s17 = smov [#allocation2]  }
  0x23   : > { %p417_p3 = scmp.ne.s32.totalorder %s598_s29, %s416_s16  ;;  %s421_s22 = sshll.u32 %s515_s17, 4  ;;  %s422_s22 = int_to_ptr.vmem [resolvable:$false] %s421_s22 }
  0x24   : > { %s423_s23 = scalar_lea.vmem %s422_s22, 256  ;;  %p424_p9 = scmp.lt.s32.totalorder %s598_s29, %s422_s22 }
  0x25   : > { %p419_p6 = pnand %p417_p3, %p403_p5  ;;  %p425_p4 = scmp.lt.s32.totalorder %s423_s23, %s416_s16 }
  0x27   : > { %p420_p11 = pneg %p419_p6  ;;  %p426_p10 = por %p425_p4, %p424_p9 }
  0x29   : > { %p427_p12 = pnand %p426_p10, %p420_p11 }
  0x2b   : > { %430 = shalt.err (!%p427_p12)
}
  0x2c   : > { %346 = dma.hbm_to_vmem [thread:$0]  (!%p602_p0), %s596_s27, 128, %s598_s29, %s104_s2  }
  0x2d   : > { %p722_p1 = scmp.lt.s32.totalorder %s513_s11, 3  ;;  %p723_p2 = scmp.ge.s32.totalorder %s513_s11, 1 }
  0x2f   : > { %p121_p5 = pnand %p723_p2, %p722_p1 }
  0x30   : > { %s638_s24 = sand.u32 (!%p121_p5), 1, %s497_s7  }
  0x31   : > { %124 = sbr.rel (%p121_p5) target bundleno = 96 (0x60), region = 24  ;;  %s333_s25 = sshll.u32 (!%p121_p5), %s638_s24, 3 }
  0x32   : > { %s127_s26 = scalar_lea.sflag (!%p121_p5), [#allocation3], %s638_s24  ;;  %s644_s28 = scalar_lea.vmem (!%p121_p5), [#allocation2], %s333_s25 }
  0x38   : > { %484 = dma.done.wait (%p574_p8), %s127_s26, 128  }
  0x39   : > { %486 = vsyncadd (%p574_p8), %s127_s26, 4294967168  ;;  %vm154_vm0 = vcmask 256000   ;;  %vm165_vm1 = vcmask 257024   ;;  %v153_v0 = vld [vmem:[%s644_s28] sm:$0x7]  ;;  %vm220_vm2 = vcmask 1040384  }
  0x3a   : > { %v155_v1 = vsel %vm154_vm0, %v153_v0, 0.0  ;;  %v164_v2 = vld [vmem:[%s644_s28] sm:$0xf]  ;;  %v188_v7 = vld [vmem:[%s644_s28 + $0x4] sm:$0xf]  ;;  %vm222_vm3 = vcmask 1041408  }
  0x3b   : > { %v174_v3 = vld [vmem:[%s644_s28] sm:$0xff]  ;;  %v156_v4 = vrot.slane %v155_v1, 4  ;;  %v166_v5 = vsel %vm165_vm1, %v164_v2, 0.0  ;;  %v189_v9 = vsel %vm165_vm1, %v188_v7, 0.0  ;;  %vm224_vm4 = vcmask 1045504   ;;  %s148_s18 = scalar_lea.vmem [#allocation5], %s333_s25 }
  0x3c   : > { %v176_v6 = vrot.slane %v174_v3, 1  ;;  %v167_v8 = vrot.slane %v166_v5, 4  ;;  %v199_v10 = vld [vmem:[%s644_s28 + $0x5] sm:$0x7]  ;;  %v190_v13 = vrot.slane %v189_v9, 4  ;;  %vm226_vm5 = vcmask 1046528  }
  0x3d   : > { %v157_v11 = vadd.f32 %v156_v4, %v155_v1  ;;  %v200_v14 = vsel %vm154_vm0, %v199_v10, 0.0  ;;  %v149_v22 = vld [vmem:[%s644_s28] sm:$0x1]  ;;  %v150_v28 = vld [vmem:[%s644_s28 + $0x7] sm:$0x1]  ;;  %s246_s27 = sshll.u32 %s148_s18, 4  ;;  %s662_s27 = int_to_ptr.vmem [resolvable:$true] %s246_s27 }
  0x3e   : > { %v178_v12 = vadd.f32 %v176_v6, %v174_v3  ;;  %v168_v15 = vadd.f32 %v167_v8, %v166_v5  ;;  %v201_v16 = vrot.slane %v200_v14, 4  ;;  %v191_v19 = vadd.f32 %v190_v13, %v189_v9  ;;  %s336_s29 = sshll.u32 %s505_s9, 7  ;;  %s232_s4 = scalar_lea.sflag [#allocation4], %s638_s24 }
  0x3f   : > { %v158_v17 = vrot.slane %v157_v11, 2  ;;  %v151_v32 = vmul.f32 2.0, %v149_v22  ;;  %v197_v39 = vmul.f32 2.0, %v150_v28  ;;  %vm229_vm6 = vcmask 261120   ;;  %s667_s3 = scalar_lea.hbm %s715_s1, %s336_s29  ;;  %s431_s5 = scalar_lea.vmem %s662_s27, 128 }
  0x40   : > { %v180_v18 = vrot.slane %v178_v12, 2  ;;  %v169_v20 = vrot.slane %v168_v15, 2  ;;  %v202_v21 = vadd.f32 %v201_v16, %v200_v14  ;;  %v192_v25 = vrot.slane %v191_v19, 2  ;;  %p432_p8 = scmp.ne.s32.totalorder %s662_s27, %s431_s5  ;;  %p724_p9 = scmp.ne.s32.totalorder %s719_s19, 0 }
  0x41   : > { %v159_v23 = vadd.f32 %v158_v17, %v157_v11  ;;  %s516_s9 = smov [#allocation5]  }
  0x42   : > { %v182_v24 = vadd.f32 %v180_v18, %v178_v12  ;;  %v170_v26 = vadd.f32 %v169_v20, %v168_v15  ;;  %v203_v27 = vrot.slane %v202_v21, 2  ;;  %v193_v31 = vadd.f32 %v192_v25, %v191_v19  ;;  %p433_p11 = pnand %p432_p8, %p724_p9  ;;  %s435_s12 = sshll.u32 %s516_s9, 4  ;;  %s436_s12 = int_to_ptr.vmem [resolvable:$false] %s435_s12 }
  0x43   : > { %v160_v29 = vrot.slane %v159_v23, 1  ;;  %s437_s13 = scalar_lea.vmem %s436_s12, 256  ;;  %p438_p7 = scmp.lt.s32.totalorder %s662_s27, %s436_s12 }
  0x44   : > { %v184_v30 = vrot.slane %v182_v24, 1  ;;  %v171_v33 = vrot.slane %v170_v26, 1  ;;  %v204_v34 = vadd.f32 %v203_v27, %v202_v21  ;;  %v194_v37 = vrot.slane %v193_v31, 1  ;;  %p434_p0 = pneg %p433_p11  ;;  %p439_p13 = scmp.lt.s32.totalorder %s437_s13, %s431_s5 }
  0x45   : > { %v161_v35 = vadd.f32 %v160_v29, %v159_v23 }
  0x46   : > { %v186_v36 = vadd.f32 %v184_v30, %v174_v3  ;;  %v172_v38 = vadd.f32 %v171_v33, %v170_v26  ;;  %v205_v40 = vrot.slane %v204_v34, 1  ;;  %v195_v41 = vadd.f32 %v194_v37, %v193_v31  ;;  %p440_p3 = por %p439_p13, %p438_p7 }
  0x47   : > { %v162_v42 = vadd.f32 %v161_v35, %v151_v32 }
  0x48   : > { %v173_v43 = vadd.f32 %v172_v38, %v149_v22  ;;  %v206_v44 = vadd.f32 %v205_v40, %v204_v34  ;;  %v196_v45 = vadd.f32 %v195_v41, %v150_v28  ;;  %v212_v46 = vrot.slane %v186_v36, 6  ;;  %p441_p6 = pnand %p440_p3, %p434_p0 }
  0x4a   : > { %v207_v47 = vadd.f32 %v206_v44, %v197_v39  ;;  %v209_v48 = vrot.slane %v173_v43, 7  ;;  %v215_v49 = vrot.slane %v196_v45, 2 }
  0x4c   : > { %v218_v50 = vrot.slane %v207_v47, 1  ;;  %v221_v51 = vsel %vm220_vm2, %v162_v42, %v209_v48 }
  0x4d   : > { %v223_v52 = vsel %vm222_vm3, %v221_v51, %v212_v46 }
  0x4e   : > { %v225_v53 = vsel %vm224_vm4, %v223_v52, %v215_v49 }
  0x4f   : > { %v227_v54 = vsel %vm226_vm5, %v225_v53, %v218_v50 }
  0x50   : > { %v228_v55 = vmul.f32 0.2, %v227_v54 }
  0x52   : > { %230 = vst.msk [vmem:[%s148_s18] sm:$0xff] %vm229_vm6, %v228_v55 }
  0x53   : > { %444 = shalt.err (!%p441_p6)
}
  0x54   : > { %s445_s15 = scalar_lea.hbm %s667_s3, 128  ;;  %s449_s22 = scalar_lea.hbm %s715_s1, 256 }
  0x55   : > { %p446_p4 = scmp.ne.s32.totalorder %s667_s3, %s445_s15  ;;  %p450_p1 = scmp.lt.u32.totalorder %s667_s3, %s715_s1 }
  0x56   : > { %p451_p2 = scmp.lt.u32.totalorder %s449_s22, %s445_s15  ;;  %p453_p8 = scmp.lt.u32.totalorder %s445_s15, %s667_s3 }
  0x57   : > { %p447_p10 = pnand %p446_p4, %p724_p9 }
  0x58   : > { %p452_p5 = por %p451_p2, %p450_p1 }
  0x59   : > { %p448_p12 = pneg %p447_p10 }
  0x5a   : > { %p454_p11 = por %p453_p8, %p452_p5 }
  0x5c   : > { %p455_p0 = pnand %p454_p11, %p448_p12 }
  0x5e   : > { %458 = shalt.err (!%p455_p0)
}
  0x5f   : > { %341 = dma.vmem_to_hbm [thread:$0]  (%p724_p9), %s662_s27, 128, %s667_s3, %s232_s4  }
  0x60 PF: > { %s258_s25 = sand.u32 1, %s493_s6   ;;  %p725_p7 = scmp.ne.s32.totalorder %s720_s21, 0 }
  0x61   : > { %p726_p13 = scmp.ge.s32.totalorder %s513_s11, 2  ;;  %s259_s26 = scalar_lea.sflag [#allocation4], %s258_s25 }
  0x63   : > { %p348_p3 = pnand %p726_p13, %p725_p7 }
  0x65   : > { %488 = dma.done.wait (!%p348_p3), %s259_s26, 128  }
  0x66   : > { %490 = vsyncadd (!%p348_p3), %s259_s26, 4294967168  ;;  %s17_s11 = sadd.s32 1, %s513_s11   ;;  %s727_s6 = smov %s497_s7 }
  0x67   : > { %p14_p6 = scmp.ge.s32.totalorder %s17_s11, 4   ;;  %s728_s7 = smov %s501_s8 }
  0x68   : > { %s729_s8 = smov %s583_s20  ;;  %s730_s9 = smov %s509_s10 }
  0x69   : > { %s731_s10 = smov %s733_s14  ;;  %16 = sbr.rel (!%p14_p6) target bundleno = 6 (0x6), region = 69 }
  0x70   :  { %264 = vsyncpa [#allocation3], 1 }
  0x71   :  { %266 = vsyncpa [#allocation3 + $0x1], 1 }
  0x72   :  { %267 = vsyncpa [#allocation4], 1 }
  0x73   :  { %269 = vsyncpa [#allocation4 + $0x1], 1 }

</bundles_post_ra>
